<compile_context>
chip_gen: v6e
topology: v6e:2x2x1
jax: 0.10.0
libtpu: 0.0.40
codegen_flags: <defaults>
</compile_context>

<pallas_src>
import functools

import jax
import jax.numpy as jnp
from jax.experimental import pallas as pl
from jax.experimental.pallas import tpu as pltpu


def _layer_norm_kernel(x_ref, o_ref, *, inv_n, eps):
    # x_ref / o_ref : (TB, C, HW) — each batch row normalized independently
    # over its full (C, HW) extent. All math in f32.
    x = x_ref[...].astype(jnp.float32)

    # Two-pass mean/variance (precision-safe). Single fused cross-lane/sublane
    # reduction per pass (XLU); rsqrt goes to the EUP. The centered temp is
    # not held live across the output write: x_ref is re-read (VMEM-cheap) so
    # the compiler can retire `centered` right after the var reduction.
    mean = jnp.sum(x, axis=(-2, -1), keepdims=True) * inv_n          # (TB,1,1)
    centered = x - mean
    var = jnp.sum(centered * centered, axis=(-2, -1), keepdims=True) * inv_n
    inv_std = jax.lax.rsqrt(var + eps)                               # EUP
    o_ref[...] = ((x_ref[...].astype(jnp.float32) - mean) * inv_std).astype(
        o_ref.dtype)


def layer_norm_nchw(x_nchw, *, eps=1e-5):
    """LayerNorm over [C, H, W] (no affine). x_nchw: (B, C, H, W) -> same shape."""
    B, C, H, W = x_nchw.shape
    HW = H * W
    n = C * HW

    # Lane/sublane-dense view: (B, C, HW); last two dims map onto (sublane,
    # lane) so loads/stores are unmasked for C % 8 == 0 and HW % 128 == 0
    # (or full-extent blocks otherwise).
    x3 = x_nchw.reshape(B, C, HW)

    # --- Generation-aware VMEM budgeting --------------------------------
    try:
        vmem_capacity = int(pltpu.get_tpu_info().vmem_capacity_bytes)
    except Exception:
        vmem_capacity = 64 * 1024 * 1024  # v7x-safe fallback
    # Usable budget: leave headroom for the compiler; never above ~96 MiB
    # (v5e/v6e) and scales down automatically on v7x (64 MiB physical).
    vmem_budget = min(int(vmem_capacity * 3 // 4), 96 * 1024 * 1024)

    # Per-batch-row working set:
    #   in + out tiles, each double-buffered : 4 * io_row_bytes
    #   in-kernel f32 copy + centered temp   : 2 * f32_row_bytes
    io_row = C * HW * x3.dtype.itemsize
    f32_row = C * HW * 4
    per_row_ws = 4 * io_row + 2 * f32_row

    tb = max(1, min(B, vmem_budget // max(1, per_row_ws)))
    # Keep >= 2 grid steps when B >= 2 so v7x's two TensorCores both get work
    # (near-zero cost on 1-TC v5e/v6e), and >= 4 steps for larger B so the
    # pipeline overlaps HBM DMA with compute.
    if B >= 8:
        tb = min(tb, pl.cdiv(B, 4))
    elif B >= 2:
        tb = min(tb, pl.cdiv(B, 2))
    grid = (pl.cdiv(B, tb),)
    # TODO(synk): if a single image's working set (per_row_ws) ever exceeds the
    # VMEM budget, add a spatially-tiled two-pass (running sum / sum-of-squares)
    # reduction path instead of relying on one (1, C, HW) block fitting.

    kernel = functools.partial(_layer_norm_kernel, inv_n=1.0 / n, eps=eps)

    # Explicit scoped-VMEM limit so the chosen tile size is honored on every
    # generation (default scoped limit is 16 MiB on v5e / 32 MiB on v6e-v7x).
    vmem_limit = int(min(vmem_capacity,
                         max(tb * per_row_ws + (4 << 20), 32 << 20)))

    out = pl.pallas_call(
        kernel,
        out_shape=jax.ShapeDtypeStruct((B, C, HW), x_nchw.dtype),
        grid_spec=pltpu.PrefetchScalarGridSpec(
            num_scalar_prefetch=0,
            grid=grid,
            in_specs=[pl.BlockSpec((tb, C, HW), lambda i: (i, 0, 0))],
            out_specs=pl.BlockSpec((tb, C, HW), lambda i: (i, 0, 0)),
        ),
        compiler_params=pltpu.CompilerParams(
            dimension_semantics=("parallel",),
            vmem_limit_bytes=vmem_limit,
        ),
    )(x3)

    return out.reshape(B, C, H, W)


def _reference(x_nchw, eps=1e-5):
    mean = jnp.mean(x_nchw, axis=(1, 2, 3), keepdims=True)
    var = jnp.mean((x_nchw - mean) ** 2, axis=(1, 2, 3), keepdims=True)
    return (x_nchw - mean) / jnp.sqrt(var + eps)


if __name__ == "__main__":
    # Module config: num_features = C = 64, spatial 16x16, batch 2.
    B, C, H, W = 2, 64, 16, 16

    key = jax.random.PRNGKey(0)
    x = jax.random.normal(key, (B, C, H, W), dtype=jnp.float32) * 2.0 + 0.5

    out = layer_norm_nchw(x)
    out = jax.block_until_ready(out)

    ref = _reference(x)
    assert out.shape == (B, C, H, W)
    assert jnp.allclose(out, ref, atol=1e-4, rtol=1e-5), float(
        jnp.max(jnp.abs(out - ref))
    )

    print("KERNEL_OK")
</pallas_src>

<mosaic_0001>
module attributes {stable_mosaic.version = 11 : i64} {
  func.func @_layer_norm_kernel(%arg0: i32, %arg1: memref<1x64x256xf32, #tpu.memory_space<vmem>>, %arg2: memref<1x64x256xf32, #tpu.memory_space<vmem>>) attributes {dimension_semantics = [#tpu.dimension_semantics<parallel>], iteration_bounds = array<i64: 2>, scalar_prefetch = 0 : i64, scratch_operands = 0 : i64, tpu.core_type = #tpu.core_type<tc>, window_params = [{transform_indices = @transform_0, window_bounds = array<i64: 1, 64, 256>}, {transform_indices = @transform_1, window_bounds = array<i64: 1, 64, 256>}]} {
    %c0 = arith.constant 0 : index
    %c0_0 = arith.constant 0 : index
    %c0_1 = arith.constant 0 : index
    %0 = vector.load %arg1[%c0, %c0_0, %c0_1] : memref<1x64x256xf32, #tpu.memory_space<vmem>>, vector<1x64x256xf32>
    %cst = arith.constant dense<0.000000e+00> : vector<1xf32>
    %1 = vector.multi_reduction <add>, %0, %cst [1, 2] : vector<1x64x256xf32> to vector<1xf32>
    %2 = vector.shape_cast %1 : vector<1xf32> to vector<1x1x1xf32>
    %cst_2 = arith.constant 6.10351563E-5 : f32
    %3 = vector.broadcast %cst_2 : f32 to vector<1x1x1xf32>
    %4 = arith.mulf %2, %3 : vector<1x1x1xf32>
    %5 = vector.broadcast %4 : vector<1x1x1xf32> to vector<1x64x256xf32>
    %6 = arith.subf %0, %5 : vector<1x64x256xf32>
    %7 = arith.mulf %6, %6 : vector<1x64x256xf32>
    %cst_3 = arith.constant dense<0.000000e+00> : vector<1xf32>
    %8 = vector.multi_reduction <add>, %7, %cst_3 [1, 2] : vector<1x64x256xf32> to vector<1xf32>
    %9 = vector.shape_cast %8 : vector<1xf32> to vector<1x1x1xf32>
    %cst_4 = arith.constant 6.10351563E-5 : f32
    %10 = vector.broadcast %cst_4 : f32 to vector<1x1x1xf32>
    %11 = arith.mulf %9, %10 : vector<1x1x1xf32>
    %cst_5 = arith.constant 9.99999974E-6 : f32
    %12 = vector.broadcast %cst_5 : f32 to vector<1x1x1xf32>
    %13 = arith.addf %11, %12 : vector<1x1x1xf32>
    %14 = math.rsqrt %13 : vector<1x1x1xf32>
    %c0_6 = arith.constant 0 : index
    %c0_7 = arith.constant 0 : index
    %c0_8 = arith.constant 0 : index
    %15 = vector.load %arg1[%c0_6, %c0_7, %c0_8] : memref<1x64x256xf32, #tpu.memory_space<vmem>>, vector<1x64x256xf32>
    %16 = vector.broadcast %4 : vector<1x1x1xf32> to vector<1x64x256xf32>
    %17 = arith.subf %15, %16 : vector<1x64x256xf32>
    %18 = vector.broadcast %14 : vector<1x1x1xf32> to vector<1x64x256xf32>
    %19 = arith.mulf %17, %18 : vector<1x64x256xf32>
    %c0_9 = arith.constant 0 : index
    %c0_10 = arith.constant 0 : index
    %c0_11 = arith.constant 0 : index
    %20 = vector.load %arg2[%c0_9, %c0_10, %c0_11] : memref<1x64x256xf32, #tpu.memory_space<vmem>>, vector<1x64x256xf32>
    tpu.vector_store %arg2[%c0_9, %c0_10, %c0_11], %19 {strides = array<i32>} : memref<1x64x256xf32, #tpu.memory_space<vmem>>, vector<1x64x256xf32>,
    return
  }
  func.func @transform_0(%arg0: i32) -> (i32, i32, i32) {
    %c0_i32 = arith.constant 0 : i32
    %c0_i32_0 = arith.constant 0 : i32
    %c0_i32_1 = arith.constant 0 : i32
    return %arg0, %c0_i32, %c0_i32_0 : i32, i32, i32
  }
  func.func @transform_1(%arg0: i32) -> (i32, i32, i32) {
    %c0_i32 = arith.constant 0 : i32
    %c0_i32_0 = arith.constant 0 : i32
    %c0_i32_1 = arith.constant 0 : i32
    return %arg0, %c0_i32, %c0_i32_0 : i32, i32, i32
  }
}

</mosaic_0001>

<bundles_post_ra>
// kernel: tpu_custom_call.1
= control target key start
LH: loop header
LB: loop body
LE: loop exit
PB: predicated region body
PF: predicated region fallthrough
CT: control target
= control target key end

     0   :  { %6 = vsyncpa [#allocation3], 0  ;;  %s725_s0 = inlined_call_operand.hbm [shape: f32[2,64,256], index: 0, kind: input, shape index: {}]   ;;  %s726_s1 = inlined_call_operand.hbm [shape: f32[2,64,256], index: 1, kind: output, shape index: {}]  }
   0x1   :  { %8 = vsyncpa [#allocation3 + $0x1], 0 }
   0x2   :  { %9 = vsyncpa [#allocation4], 0 }
   0x3   :  { %11 = vsyncpa [#allocation4 + $0x1], 0  ;;  %s530_s6 = smov 0   ;;  %s532_s7 = smov 0  }
   0x4   :  { %s534_s8 = smov 0   ;;  %s536_s9 = smov 0  }
   0x5 LB: > { %s551_s10 = sadd.s32 4294967295, %s512_s9   ;;  %s352_s11 = sadd.s32 4294967294, %s512_s9   ;;  %s512_s9 = sphi %s536_s9, %s741_s9   ;;  %s508_s8 = sphi %s534_s8, %s740_s8   ;;  %s504_s7 = sphi %s532_s7, %s739_s7   ;;  %s500_s6 = sphi %s530_s6, %s738_s6  }
   0x6   : > { %s555_s12 = sadd.s32 1, %s512_s9   ;;  %s24_s13 = sadd.s32 1, %s508_s8 }
   0x7   : > { %s21_s14 = ssub.s32 %s512_s9, %s555_s12  ;;  %p31_p0 = scmp.ne.s32.totalorder %s508_s8, %s504_s7 }
   0x8   : > { %p22_p1 = scmp.eq.s32.totalorder %s21_s14, 0  ;;  %p32_p2 = scmp.eq.s32.totalorder %s512_s9, 0 }
   0x9   : > { %p37_p3 = scmp.ne.s32.totalorder %s504_s7, %s500_s6  ;;  %p38_p4 = scmp.eq.s32.totalorder %s551_s10, 0 }
   0xa   : > { %s567_s15 = scalar_select %p22_p1, %s508_s8, %s24_s13  }
   0xb   : > { %p569_p5 = por %p32_p2, %p31_p0  ;;  %p573_p6 = por %p38_p4, %p37_p3 }
   0xc   : > { %p61_p7 = scmp.eq.s32.totalorder %s551_s10, 1  ;;  %p67_p8 = scmp.eq.s32.totalorder %s352_s11, 1 }
   0xd   : > { %s730_s17 = scalar_select %p573_p6, 1, 0 }
   0xe   : > { %p380_p10 = scmp.lt.s32.totalorder %s512_s9, 2  ;;  %p580_p11 = por %p61_p7, %p31_p0 }
   0xf   : > { %p584_p12 = por %p67_p8, %p37_p3  ;;  %s87_s20 = sand.u32 1, %s508_s8  }
  0x10   : > { %s731_s18 = scalar_select %p580_p11, 1, 0 }
  0x11   : > { %s732_s19 = scalar_select %p584_p12, 1, 0 }
  0x12   : > { %s366_s21 = sshll.u32 %s512_s9, 11  ;;  %s355_s22 = sshll.u32 %s87_s20, 7 }
  0x13   : > { %s593_s25 = scalar_lea.hbm %s725_s0, %s366_s21  ;;  %s91_s26 = scalar_lea.vmem [#allocation2], %s355_s22 }
  0x14   : > { %s98_s27 = sshll.u32 %s91_s26, 4  ;;  %p597_p13 = pnand %p380_p10, %p569_p5  ;;  %s601_s27 = int_to_ptr.vmem [resolvable:$true] %s98_s27 }
  0x15   : > { %s603_s29 = scalar_lea.sflag [#allocation3], %s87_s20  ;;  %s420_s30 = scalar_lea.hbm %s593_s25, 2048 }
  0x16   : > { %p421_p0 = scmp.ne.s32.totalorder %s593_s25, %s420_s30  ;;  %p422_p1 = pneg %p597_p13 }
  0x17   : > { %s425_s4 = scalar_lea.hbm %s725_s0, 4096  ;;  %p426_p4 = scmp.lt.s32.totalorder %s593_s25, %s725_s0 }
  0x18   : > { %p423_p2 = pnand %p422_p1, %p421_p0  ;;  %p427_p5 = scmp.lt.s32.totalorder %s425_s4, %s420_s30 }
  0x1a   : > { %p424_p3 = pneg %p423_p2  ;;  %p428_p7 = por %p427_p5, %p426_p4 }
  0x1c   : > { %p429_p8 = pnand %p428_p7, %p424_p3 }
  0x1e   : > { %432 = shalt.err (!%p429_p8)
}
  0x1f   : > { %s433_s13 = scalar_lea.vmem %s601_s27, 2048  ;;  %s514_s14 = smov [#allocation2]  }
  0x20   : > { %p434_p10 = scmp.ne.s32.totalorder %s601_s27, %s433_s13  ;;  %s438_s16 = sshll.u32 %s514_s14, 4  ;;  %s439_s16 = int_to_ptr.vmem [resolvable:$false] %s438_s16 }
  0x21   : > { %s440_s20 = scalar_lea.vmem %s439_s16, 4096  ;;  %p441_p2 = scmp.lt.s32.totalorder %s601_s27, %s439_s16 }
  0x22   : > { %p436_p9 = pnand %p434_p10, %p422_p1  ;;  %p442_p12 = scmp.lt.s32.totalorder %s440_s20, %s433_s13 }
  0x24   : > { %p437_p0 = pneg %p436_p9  ;;  %p443_p11 = por %p442_p12, %p441_p2 }
  0x26   : > { %p444_p6 = pnand %p443_p11, %p437_p0 }
  0x28   : > { %447 = shalt.err (!%p444_p6)
}
  0x29   : > { %s515_s21 = smov 256   ;;  %s516_s22 = smov 16  }
  0x2a   : > { %375 = dma.hbm_to_vmem [thread:$0]  (!%p597_p13), %s593_s25, 2048, %s601_s27, %s603_s29, %s515_s21, %s515_s21, %s516_s22  }
  0x2b   : > { %p358_p9 = scmp.ge.s32.totalorder %s512_s9, 1  ;;  %p106_p1 = scmp.lt.s32.totalorder %s512_s9, 3 }
  0x2d   : > { %p107_p3 = pnand %p358_p9, %p106_p1 }
  0x2e   : > { %s627_s23 = sand.u32 (!%p107_p3), 1, %s504_s7   ;;  %p734_p6 = scmp.ne.s32.totalorder (!%p107_p3), %s730_s17, 0 }
  0x2f   : > { %110 = sbr.rel (%p107_p3) target bundleno = 462 (0x1ce), region = 24  ;;  %s359_s24 = sshll.u32 (!%p107_p3), %s627_s23, 7 }
  0x30   : > { %s113_s26 = scalar_lea.sflag (!%p107_p3), [#allocation3], %s627_s23  ;;  %s633_s30 = scalar_lea.vmem (!%p107_p3), [#allocation2], %s359_s24 }
  0x34   : > { %491 = dma.done.wait (%p734_p6), %s113_s26, 2048  }
  0x35   : > { %493 = vsyncadd (%p734_p6), %s113_s26, 4294965248  ;;  %v135_v0 = vld [vmem:[%s633_s30] sm:$0xff]  ;;  %v136_v1 = vld [vmem:[%s633_s30 + $0x8] sm:$0xff]  ;;  %s367_s17 = sshll.u32 %s551_s10, 11  ;;  %s658_s25 = scalar_lea.vmem [#allocation5], %s359_s24 }
  0x36   : > { %v137_v2 = vld [vmem:[%s633_s30 + $0x10] sm:$0xff]  ;;  %v151_v3 = vadd.f32 %v136_v1, %v135_v0  ;;  %v138_v4 = vld [vmem:[%s633_s30 + $0x18] sm:$0xff]  ;;  %v139_v6 = vld [vmem:[%s633_s30 + $0x20] sm:$0xff]  ;;  %s279_s27 = sshll.u32 %s658_s25, 4  ;;  %s668_s29 = scalar_lea.hbm %s726_s1, %s367_s17  ;;  %s670_s27 = int_to_ptr.vmem [resolvable:$true] %s279_s27 }
  0x37   : > { %v140_v8 = vld [vmem:[%s633_s30 + $0x28] sm:$0xff]  ;;  %v141_v10 = vld [vmem:[%s633_s30 + $0x30] sm:$0xff]  ;;  %v142_v12 = vld [vmem:[%s633_s30 + $0x38] sm:$0xff]  ;;  %s266_s2 = scalar_lea.sflag [#allocation4], %s627_s23  ;;  %s448_s3 = scalar_lea.vmem %s670_s27, 2048 }
  0x38   : > { %v152_v5 = vadd.f32 %v151_v3, %v137_v2  ;;  %v143_v14 = vld [vmem:[%s633_s30 + $0x40] sm:$0xff]  ;;  %v144_v16 = vld [vmem:[%s633_s30 + $0x48] sm:$0xff]  ;;  %v145_v18 = vld [vmem:[%s633_s30 + $0x50] sm:$0xff]  ;;  %p449_p11 = scmp.ne.s32.totalorder %s670_s27, %s448_s3  ;;  %p735_p12 = scmp.ne.s32.totalorder %s731_s18, 0 }
  0x39   : > { %v146_v20 = vld [vmem:[%s633_s30 + $0x58] sm:$0xff]  ;;  %v147_v22 = vld [vmem:[%s633_s30 + $0x60] sm:$0xff]  ;;  %v148_v24 = vld [vmem:[%s633_s30 + $0x68] sm:$0xff]  ;;  %s517_s4 = smov [#allocation5]  }
  0x3a   : > { %v153_v7 = vadd.f32 %v152_v5, %v138_v4  ;;  %v149_v26 = vld [vmem:[%s633_s30 + $0x70] sm:$0xff]  ;;  %v150_v28 = vld [vmem:[%s633_s30 + $0x78] sm:$0xff]  ;;  %p450_p13 = pnand %p449_p11, %p735_p12  ;;  %s452_s5 = sshll.u32 %s517_s4, 4  ;;  %s453_s5 = int_to_ptr.vmem [resolvable:$false] %s452_s5 }
  0x3b   : > { %s454_s11 = scalar_lea.vmem %s453_s5, 4096  ;;  %p455_p5 = scmp.lt.s32.totalorder %s670_s27, %s453_s5 }
  0x3c   : > { %v154_v9 = vadd.f32 %v153_v7, %v139_v6  ;;  %p451_p4 = pneg %p450_p13  ;;  %p456_p7 = scmp.lt.s32.totalorder %s454_s11, %s448_s3 }
  0x3e   : > { %v155_v11 = vadd.f32 %v154_v9, %v140_v8  ;;  %p457_p8 = por %p456_p7, %p455_p5 }
  0x40   : > { %v156_v13 = vadd.f32 %v155_v11, %v141_v10  ;;  %p458_p10 = pnand %p457_p8, %p451_p4 }
  0x42   : > { %v157_v15 = vadd.f32 %v156_v13, %v142_v12 }
  0x44   : > { %v158_v17 = vadd.f32 %v157_v15, %v143_v14 }
  0x46   : > { %v159_v19 = vadd.f32 %v158_v17, %v144_v16 }
  0x48   : > { %v160_v21 = vadd.f32 %v159_v19, %v145_v18 }
  0x4a   : > { %v161_v23 = vadd.f32 %v160_v21, %v146_v20 }
  0x4c   : > { %v162_v25 = vadd.f32 %v161_v23, %v147_v22 }
  0x4e   : > { %v163_v27 = vadd.f32 %v162_v25, %v148_v24 }
  0x50   : > { %v164_v29 = vadd.f32 %v163_v27, %v149_v26 }
  0x52   : > { %v165_v30 = vadd.f32 %v164_v29, %v150_v28 }
  0x54   : > { %166 = vadd.xlane.f32.xlu0 %v165_v30 }
  0xdd   : > { %v167_v31 = vpop.xlane.xlu0 %166 }
  0xde   : > { %v168_v32 = vrot.slane %v167_v31, 4 }
  0xe0   : > { %v169_v33 = vadd.f32 %v168_v32, %v167_v31 }
  0xe2   : > { %v170_v34 = vrot.slane %v169_v33, 2 }
  0xe4   : > { %v171_v35 = vadd.f32 %v170_v34, %v169_v33 }
  0xe6   : > { %v172_v36 = vrot.slane %v171_v35, 1 }
  0xe8   : > { %v173_v37 = vadd.f32 %v172_v36, %v171_v35 }
  0xea   : > { %v174_v38 = vmul.f32 6.1035156e-05, %v173_v37 }
  0xec   : > { %v175_v39 = vsub.f32 %v135_v0, %v174_v38  ;;  %v176_v40 = vsub.f32 %v136_v1, %v174_v38  ;;  %v177_v41 = vsub.f32 %v137_v2, %v174_v38  ;;  %v178_v44 = vsub.f32 %v138_v4, %v174_v38 }
  0xed   : > { %v179_v45 = vsub.f32 %v139_v6, %v174_v38  ;;  %v180_v48 = vsub.f32 %v140_v8, %v174_v38  ;;  %v181_v51 = vsub.f32 %v141_v10, %v174_v38  ;;  %v182_v54 = vsub.f32 %v142_v12, %v174_v38 }
  0xee   : > { %v191_v42 = vmul.f32 %v175_v39, %v175_v39  ;;  %v192_v43 = vmul.f32 %v176_v40, %v176_v40  ;;  %v193_v46 = vmul.f32 %v177_v41, %v177_v41  ;;  %v194_v49 = vmul.f32 %v178_v44, %v178_v44 }
  0xef   : > { %v195_v52 = vmul.f32 %v179_v45, %v179_v45  ;;  %v196_v55 = vmul.f32 %v180_v48, %v180_v48  ;;  %v183_v57 = vsub.f32 %v143_v14, %v174_v38  ;;  %v197_v58 = vmul.f32 %v181_v51, %v181_v51 }
  0xf0   : > { %v207_v47 = vadd.f32 %v192_v43, %v191_v42  ;;  %v184_v60 = vsub.f32 %v144_v16, %v174_v38  ;;  %v198_v61 = vmul.f32 %v182_v54, %v182_v54  ;;  %v185_v63 = vsub.f32 %v145_v18, %v174_v38 }
  0xf1   : > { %v199_v0 = vmul.f32 %v183_v57, %v183_v57  ;;  %v186_v2 = vsub.f32 %v146_v20, %v174_v38  ;;  %v187_v5 = vsub.f32 %v147_v22, %v174_v38  ;;  %v188_v8 = vsub.f32 %v148_v24, %v174_v38 }
  0xf2   : > { %v208_v50 = vadd.f32 %v207_v47, %v193_v46  ;;  %v200_v3 = vmul.f32 %v184_v60, %v184_v60  ;;  %v201_v6 = vmul.f32 %v185_v63, %v185_v63  ;;  %v189_v11 = vsub.f32 %v149_v26, %v174_v38 }
  0xf3   : > { %v202_v9 = vmul.f32 %v186_v2, %v186_v2  ;;  %v203_v12 = vmul.f32 %v187_v5, %v187_v5  ;;  %v190_v14 = vsub.f32 %v150_v28, %v174_v38  ;;  %v204_v15 = vmul.f32 %v188_v8, %v188_v8 }
  0xf4   : > { %v209_v53 = vadd.f32 %v208_v50, %v194_v49  ;;  %v205_v17 = vmul.f32 %v189_v11, %v189_v11 }
  0xf5   : > { %v206_v18 = vmul.f32 %v190_v14, %v190_v14 }
  0xf6   : > { %v210_v56 = vadd.f32 %v209_v53, %v195_v52 }
  0xf8   : > { %v211_v59 = vadd.f32 %v210_v56, %v196_v55 }
  0xfa   : > { %v212_v62 = vadd.f32 %v211_v59, %v197_v58 }
  0xfc   : > { %v213_v1 = vadd.f32 %v212_v62, %v198_v61 }
  0xfe   : > { %v214_v4 = vadd.f32 %v213_v1, %v199_v0 }
 0x100   : > { %v215_v7 = vadd.f32 %v214_v4, %v200_v3 }
 0x102   : > { %v216_v10 = vadd.f32 %v215_v7, %v201_v6 }
 0x104   : > { %v217_v13 = vadd.f32 %v216_v10, %v202_v9 }
 0x106   : > { %v218_v16 = vadd.f32 %v217_v13, %v203_v12 }
 0x108   : > { %v219_v19 = vadd.f32 %v218_v16, %v204_v15 }
 0x10a   : > { %v220_v20 = vadd.f32 %v219_v19, %v205_v17 }
 0x10c   : > { %v221_v21 = vadd.f32 %v220_v20, %v206_v18 }
 0x10e   : > { %222 = vadd.xlane.f32.xlu0 %v221_v21 }
 0x197   : > { %v223_v22 = vpop.xlane.xlu0 %222 }
 0x198   : > { %v224_v23 = vrot.slane %v223_v22, 4 }
 0x19a   : > { %v225_v25 = vadd.f32 %v224_v23, %v223_v22 }
 0x19c   : > { %v226_v24 = vrot.slane %v225_v25, 2 }
 0x19e   : > { %v227_v27 = vadd.f32 %v226_v24, %v225_v25 }
 0x1a0   : > { %v228_v29 = vrot.slane %v227_v27, 1 }
 0x1a2   : > { %v229_v26 = vadd.f32 %v228_v29, %v227_v27 }
 0x1a4   : > { %v230_v30 = vmul.f32 6.1035156e-05, %v229_v26 }
 0x1a6   : > { %v231_v31 = vadd.f32 1e-05, %v230_v30 }
 0x1a8   : > { %418 = vrsqrt.f32 %v231_v31 }
 0x1b5   : > { %v419_v28 = vpop.eup %418 }
 0x1b6   : > { %v233_v32 = vmul.f32 %v419_v28, %v175_v39  ;;  %v234_v33 = vmul.f32 %v419_v28, %v176_v40  ;;  %v235_v34 = vmul.f32 %v419_v28, %v177_v41  ;;  %v236_v35 = vmul.f32 %v419_v28, %v178_v44 }
 0x1b7   : > { %v237_v36 = vmul.f32 %v419_v28, %v179_v45  ;;  %v238_v37 = vmul.f32 %v419_v28, %v180_v48  ;;  %v239_v38 = vmul.f32 %v419_v28, %v181_v51  ;;  %v240_v42 = vmul.f32 %v419_v28, %v182_v54 }
 0x1b8   : > { %v241_v43 = vmul.f32 %v419_v28, %v183_v57  ;;  %v242_v46 = vmul.f32 %v419_v28, %v184_v60  ;;  %v243_v47 = vmul.f32 %v419_v28, %v185_v63  ;;  %v244_v49 = vmul.f32 %v419_v28, %v186_v2  ;;  %249 = vst [vmem:[%s658_s25] sm:$0xff] %v233_v32 }
 0x1b9   : > { %250 = vst [vmem:[%s658_s25 + $0x8] sm:$0xff] %v234_v33  ;;  %251 = vst [vmem:[%s658_s25 + $0x10] sm:$0xff] %v235_v34  ;;  %v245_v39 = vmul.f32 %v419_v28, %v187_v5  ;;  %v246_v40 = vmul.f32 %v419_v28, %v188_v8  ;;  %v247_v41 = vmul.f32 %v419_v28, %v189_v11 }
 0x1ba   : > { %252 = vst [vmem:[%s658_s25 + $0x18] sm:$0xff] %v236_v35  ;;  %v248_v44 = vmul.f32 %v419_v28, %v190_v14  ;;  %253 = vst [vmem:[%s658_s25 + $0x20] sm:$0xff] %v237_v36 }
 0x1bb   : > { %254 = vst [vmem:[%s658_s25 + $0x28] sm:$0xff] %v238_v37  ;;  %255 = vst [vmem:[%s658_s25 + $0x30] sm:$0xff] %v239_v38 }
 0x1bc   : > { %256 = vst [vmem:[%s658_s25 + $0x38] sm:$0xff] %v240_v42  ;;  %257 = vst [vmem:[%s658_s25 + $0x40] sm:$0xff] %v241_v43 }
 0x1bd   : > { %258 = vst [vmem:[%s658_s25 + $0x48] sm:$0xff] %v242_v46  ;;  %259 = vst [vmem:[%s658_s25 + $0x50] sm:$0xff] %v243_v47 }
 0x1be   : > { %260 = vst [vmem:[%s658_s25 + $0x58] sm:$0xff] %v244_v49  ;;  %261 = vst [vmem:[%s658_s25 + $0x60] sm:$0xff] %v245_v39 }
 0x1bf   : > { %262 = vst [vmem:[%s658_s25 + $0x68] sm:$0xff] %v246_v40  ;;  %263 = vst [vmem:[%s658_s25 + $0x70] sm:$0xff] %v247_v41 }
 0x1c0   : > { %264 = vst [vmem:[%s658_s25 + $0x78] sm:$0xff] %v248_v44 }
 0x1c1   : > { %461 = shalt.err (!%p458_p10)
}
 0x1c2   : > { %s462_s13 = scalar_lea.hbm %s668_s29, 2048  ;;  %s466_s20 = scalar_lea.hbm %s726_s1, 4096 }
 0x1c3   : > { %p463_p0 = scmp.ne.s32.totalorder %s668_s29, %s462_s13  ;;  %p467_p1 = scmp.lt.s32.totalorder %s668_s29, %s726_s1 }
 0x1c4   : > { %p468_p3 = scmp.lt.s32.totalorder %s466_s20, %s462_s13 }
 0x1c5   : > { %p464_p2 = pnand %p463_p0, %p735_p12 }
 0x1c6   : > { %p469_p6 = por %p468_p3, %p467_p1 }
 0x1c7   : > { %p465_p9 = pneg %p464_p2 }
 0x1c9   : > { %p470_p11 = pnand %p469_p6, %p465_p9 }
 0x1cb   : > { %473 = shalt.err (!%p470_p11)
}
 0x1cc   : > { %s518_s24 = smov 256   ;;  %s519_s26 = smov 16  }
 0x1cd   : > { %370 = dma.vmem_to_hbm [thread:$0]  (%p735_p12), %s670_s27, 2048, %s668_s29, %s266_s2, %s518_s24, %s518_s24, %s519_s26  }
 0x1ce PF: > { %s294_s30 = sand.u32 1, %s500_s6   ;;  %p736_p13 = scmp.ne.s32.totalorder %s732_s19, 0 }
 0x1cf   : > { %p737_p4 = scmp.ge.s32.totalorder %s512_s9, 2  ;;  %s295_s17 = scalar_lea.sflag [#allocation4], %s294_s30 }
 0x1d1   : > { %p377_p5 = pnand %p737_p4, %p736_p13 }
 0x1d3   : > { %p378_p7 = pneg %p377_p5 }
 0x1d5   : > { %495 = dma.done.wait (%p378_p7), %s295_s17, 2048  }
 0x1d6   : > { %497 = vsyncadd (%p378_p7), %s295_s17, 4294965248  ;;  %p14_p8 = scmp.ge.s32.totalorder %s555_s12, 4   ;;  %s738_s6 = smov %s504_s7 }
 0x1d7   : > { %s739_s7 = smov %s508_s8  ;;  %s740_s8 = smov %s567_s15 }
 0x1d8   : > { %s741_s9 = smov %s555_s12  ;;  %16 = sbr.rel (!%p14_p8) target bundleno = 5 (0x5), region = 69 }
 0x1dd   :  { %300 = vsyncpa [#allocation3], 1 }
 0x1de   :  { %302 = vsyncpa [#allocation3 + $0x1], 1 }
 0x1df   :  { %303 = vsyncpa [#allocation4], 1 }
 0x1e0   :  { %305 = vsyncpa [#allocation4 + $0x1], 1 }

</bundles_post_ra>
